<compile_context>
chip_gen: v5e
topology: v5e:2x2
jax: 0.10.0
libtpu: 0.0.40
codegen_flags: <defaults>
</compile_context>

<pallas_src>
import functools
import math

import jax
import jax.numpy as jnp
from jax.experimental import pallas as pl
from jax.experimental.pallas import tpu as pltpu


def _default_vmem_limit():
    """~75% of physical VMEM, capped at 96 MiB (v5e/v6e: 96 MiB, v7x: ~48 MiB)."""
    try:
        cap = pltpu.get_tpu_info().vmem_capacity_bytes
        return min(int(cap * 3 // 4), 96 * 1024 * 1024)
    except Exception:
        return 48 * 1024 * 1024  # safe on every generation (v7x physical = 64 MiB)


_VMEM_LIMIT = _default_vmem_limit()


def _sublane_quantum(dtype):
    # bf16 packs 16 rows per sublane group; f32 packs 8.
    return 16 if jnp.dtype(dtype).itemsize == 2 else 8


def _choose_tile(dim, max_tile, quantum):
    """Largest tile <= max_tile that divides dim and is a multiple of quantum.

    Falls back to the full dim (a full-extent block is always legal).
    NOTE: for very large, oddly-shaped dims this fallback can exceed the VMEM
    budget — acceptable for this model's shapes.
    """
    if dim <= max_tile:
        return dim
    t = (max_tile // quantum) * quantum
    while t >= quantum:
        if dim % t == 0:
            return t
        t -= quantum
    return dim


def _epilogue(y, act, fuse_ln, r_ref, g_ref, bt_ref, eps):
    if act == "gelu":
        # tanh-approx GELU.  # TODO(synk): exact erf-based gelu to bit-match HF BERT
        y = 0.5 * y * (1.0 + jnp.tanh(
            0.7978845608028654 * (y + 0.044715 * y * y * y)))
    elif act == "tanh":
        y = jnp.tanh(y)
    if fuse_ln:
        y = y + r_ref[...].astype(jnp.float32)
        mu = jnp.mean(y, axis=-1, keepdims=True)
        var = jnp.mean(jnp.square(y - mu), axis=-1, keepdims=True)
        y = (y - mu) * jax.lax.rsqrt(var + eps)
        y = y * g_ref[...].astype(jnp.float32) + bt_ref[...].astype(jnp.float32)
    return y


# ----------------------------------------------------------------------------
# Fused dense: matmul + bias (+ activation) (+ residual + LayerNorm)
# ----------------------------------------------------------------------------
def _dense_resident_kernel(x_ref, w_ref, b_ref, *rest, act, fuse_ln, eps):
    """Weight-resident path: whole (K, N) weight lives in VMEM; grid over M only."""
    if fuse_ln:
        r_ref, g_ref, bt_ref, o_ref = rest
    else:
        r_ref = g_ref = bt_ref = None
        (o_ref,) = rest
    y = jnp.dot(x_ref[...], w_ref[...], preferred_element_type=jnp.float32)
    y = y + b_ref[...].astype(jnp.float32)
    y = _epilogue(y, act, fuse_ln, r_ref, g_ref, bt_ref, eps)
    o_ref[...] = y.astype(o_ref.dtype)


def _dense_ktiled_kernel(x_ref, w_ref, b_ref, *rest, act, fuse_ln, eps):
    """Fallback path for weights that do not fit in VMEM: K-tiled accumulator."""
    if fuse_ln:
        r_ref, g_ref, bt_ref, o_ref, acc_ref = rest
    else:
        r_ref = g_ref = bt_ref = None
        o_ref, acc_ref = rest

    k = pl.program_id(1)

    @pl.when(k == 0)
    def _():
        acc_ref[...] = jnp.zeros_like(acc_ref)

    acc_ref[...] += jnp.dot(x_ref[...], w_ref[...],
                            preferred_element_type=jnp.float32)

    @pl.when(k == pl.num_programs(1) - 1)
    def _():
        y = acc_ref[...] + b_ref[...].astype(jnp.float32)
        y = _epilogue(y, act, fuse_ln, r_ref, g_ref, bt_ref, eps)
        o_ref[...] = y.astype(o_ref.dtype)


def dense(x, w, b, *, act="none", residual=None, ln=None, eps=1e-12,
          out_dtype=None, max_tm=512, max_tk=512):
    """y = act(x @ w + b); optionally LayerNorm(y + residual) fused in epilogue.

    N (output features) stays whole so LayerNorm over the hidden axis runs in
    the epilogue.
    """
    M, K = x.shape
    N = w.shape[1]
    out_dtype = out_dtype or x.dtype
    fuse_ln = ln is not None
    tm = _choose_tile(M, max_tm, _sublane_quantum(x.dtype))

    # Rough VMEM estimate for the weight-resident path (weight single-buffered
    # thanks to the constant block index; activation tiles double-buffered).
    est = (w.size * jnp.dtype(w.dtype).itemsize
           + 2 * tm * K * jnp.dtype(x.dtype).itemsize
           + 2 * tm * N * jnp.dtype(out_dtype).itemsize
           + (2 * tm * N * jnp.dtype(residual.dtype).itemsize if fuse_ln else 0)
           + tm * N * 4)  # f32 epilogue temporaries headroom
    weight_resident = est <= int(0.6 * _VMEM_LIMIT)

    if weight_resident:
        in_specs = [
            pl.BlockSpec((tm, K), lambda i: (i, 0)),
            pl.BlockSpec((K, N), lambda i: (0, 0)),   # constant index -> resident weight
            pl.BlockSpec((1, N), lambda i: (0, 0)),
        ]
        operands = [x, w, b.reshape(1, N)]
        if fuse_ln:
            gamma, beta = ln
            in_specs += [
                pl.BlockSpec((tm, N), lambda i: (i, 0)),
                pl.BlockSpec((1, N), lambda i: (0, 0)),
                pl.BlockSpec((1, N), lambda i: (0, 0)),
            ]
            operands += [residual, gamma.reshape(1, N), beta.reshape(1, N)]
        return pl.pallas_call(
            functools.partial(_dense_resident_kernel, act=act, fuse_ln=fuse_ln,
                              eps=eps),
            grid=(M // tm,),
            in_specs=in_specs,
            out_specs=pl.BlockSpec((tm, N), lambda i: (i, 0)),
            out_shape=jax.ShapeDtypeStruct((M, N), out_dtype),
            compiler_params=pltpu.CompilerParams(
                dimension_semantics=("parallel",),
                vmem_limit_bytes=_VMEM_LIMIT),
        )(*operands)

    # ---- fallback: K-tiled accumulator for very large weights ----
    # TODO(synk): pipeline_mode=pl.Buffered(3) on the weight block once profiled.
    tk = _choose_tile(K, max_tk, 128)
    in_specs = [
        pl.BlockSpec((tm, tk), lambda i, k: (i, k)),
        pl.BlockSpec((tk, N), lambda i, k: (k, 0)),
        pl.BlockSpec((1, N), lambda i, k: (0, 0)),
    ]
    operands = [x, w, b.reshape(1, N)]
    if fuse_ln:
        gamma, beta = ln
        in_specs += [
            pl.BlockSpec((tm, N), lambda i, k: (i, 0)),
            pl.BlockSpec((1, N), lambda i, k: (0, 0)),
            pl.BlockSpec((1, N), lambda i, k: (0, 0)),
        ]
        operands += [residual, gamma.reshape(1, N), beta.reshape(1, N)]
    return pl.pallas_call(
        functools.partial(_dense_ktiled_kernel, act=act, fuse_ln=fuse_ln, eps=eps),
        grid=(M // tm, K // tk),
        in_specs=in_specs,
        out_specs=pl.BlockSpec((tm, N), lambda i, k: (i, 0)),
        out_shape=jax.ShapeDtypeStruct((M, N), out_dtype),
        scratch_shapes=[pltpu.VMEM((tm, N), jnp.float32)],
        compiler_params=pltpu.CompilerParams(
            dimension_semantics=("parallel", "arbitrary"),
            vmem_limit_bytes=_VMEM_LIMIT),
    )(*operands)


# ----------------------------------------------------------------------------
# LayerNorm-only kernel (embeddings) — no residual read
# ----------------------------------------------------------------------------
def _ln_kernel(x_ref, g_ref, b_ref, o_ref, *, eps):
    x = x_ref[...].astype(jnp.float32)
    mu = jnp.mean(x, axis=-1, keepdims=True)
    var = jnp.mean(jnp.square(x - mu), axis=-1, keepdims=True)
    y = (x - mu) * jax.lax.rsqrt(var + eps)
    o_ref[...] = (y * g_ref[...] + b_ref[...]).astype(o_ref.dtype)


def layernorm(x, gamma, beta, *, eps=1e-12, out_dtype=None, max_tm=1024):
    M, H = x.shape
    out_dtype = out_dtype or x.dtype
    tm = _choose_tile(M, max_tm, _sublane_quantum(x.dtype))
    return pl.pallas_call(
        functools.partial(_ln_kernel, eps=eps),
        grid=(M // tm,),
        in_specs=[
            pl.BlockSpec((tm, H), lambda i: (i, 0)),
            pl.BlockSpec((1, H), lambda i: (0, 0)),
            pl.BlockSpec((1, H), lambda i: (0, 0)),
        ],
        out_specs=pl.BlockSpec((tm, H), lambda i: (i, 0)),
        out_shape=jax.ShapeDtypeStruct((M, H), out_dtype),
        compiler_params=pltpu.CompilerParams(
            dimension_semantics=("parallel",),
            vmem_limit_bytes=_VMEM_LIMIT),
    )(x, gamma.reshape(1, H), beta.reshape(1, H))


# ----------------------------------------------------------------------------
# Attention directly on the flat fused-QKV buffer — no head split/merge copies
# ----------------------------------------------------------------------------
def _attn_kernel(qkv_ref, bias_ref, o_ref, *, nh, hd, scale):
    """qkv_ref: (S, 3H) for one batch; bias_ref: (1, 1, S); o_ref: (S, H)."""
    H = nh * hd
    bias = bias_ref[0]                      # (1, S) additive mask, broadcast over query rows
    ctxs = []
    for h in range(nh):                     # static unroll; slices are compile-time
        q = qkv_ref[:, h * hd:(h + 1) * hd]
        k = qkv_ref[:, H + h * hd:H + (h + 1) * hd]
        v = qkv_ref[:, 2 * H + h * hd:2 * H + (h + 1) * hd]
        # scores: contract head_dim of q and k directly (no transpose materialized)
        s = jax.lax.dot_general(q, k, (((1,), (1,)), ((), ())),
                                preferred_element_type=jnp.float32) * scale
        s = s + bias
        m = jnp.max(s, axis=-1, keepdims=True)
        p = jnp.exp(s - m)
        l = jnp.sum(p, axis=-1, keepdims=True)
        p = p * pl.reciprocal(l, approx=True)       # EUP reciprocal, not VPU divide
        ctxs.append(jnp.dot(p.astype(v.dtype), v,
                            preferred_element_type=jnp.float32))
    # single lane-dense full-width store of the merged heads
    o_ref[...] = jnp.concatenate(ctxs, axis=-1).astype(o_ref.dtype)
    # TODO(synk): online-softmax (flash) K/V tiling with m/l/acc scratch for S >= 1024.


def attention(qkv, bias, *, batch, seq, num_heads, head_dim, out_dtype):
    """qkv: (B*S, 3H) fused projection output;  bias: (B, 1, S) additive mask.

    Returns merged context (B*S, H) ready for the output projection — the head
    split / transpose / merge passes of the naive implementation never touch HBM.
    """
    H = num_heads * head_dim
    return pl.pallas_call(
        functools.partial(_attn_kernel, nh=num_heads, hd=head_dim,
                          scale=1.0 / math.sqrt(head_dim)),
        grid=(batch,),
        in_specs=[
            pl.BlockSpec((seq, 3 * H), lambda b: (b, 0)),
            pl.BlockSpec((1, 1, seq), lambda b: (b, 0, 0)),  # same mask for every head
        ],
        out_specs=pl.BlockSpec((seq, H), lambda b: (b, 0)),
        out_shape=jax.ShapeDtypeStruct((batch * seq, H), out_dtype),
        compiler_params=pltpu.CompilerParams(
            dimension_semantics=("parallel",),
            vmem_limit_bytes=_VMEM_LIMIT),
    )(qkv, bias)


# ----------------------------------------------------------------------------
# Parameter construction (deterministic, mirrors _my_init)
# ----------------------------------------------------------------------------
def init_params(key, *, vocab=64, max_pos=16, type_vocab=2, hidden=32,
                num_heads=4, intermediate=64, num_layers=2, n_class=3,
                init_ratio=1.0, param_dtype=jnp.bfloat16):
    std = 0.02 * init_ratio
    keys = iter(jax.random.split(key, 8 + num_layers * 8))

    def nrm(shape, dtype=param_dtype):
        return (std * jax.random.normal(next(keys), shape, jnp.float32)).astype(dtype)

    params = {
        "num_heads": num_heads,
        "word_emb": nrm((vocab, hidden)),
        "pos_emb": nrm((max_pos, hidden)),
        "tok_emb": nrm((type_vocab, hidden)),
        "emb_ln_g": jnp.ones((hidden,), jnp.float32),
        "emb_ln_b": jnp.zeros((hidden,), jnp.float32),
        # pooler / classifier stay f32: they run in plain JAX (tiny shapes)
        "pool_w": nrm((hidden, hidden), jnp.float32),
        "pool_b": jnp.zeros((hidden,), jnp.float32),
        "cls_w": nrm((hidden, n_class), jnp.float32),
        "cls_b": jnp.zeros((n_class,), jnp.float32),
        "layers": [],
    }
    for _ in range(num_layers):
        params["layers"].append({
            "w_qkv": nrm((hidden, 3 * hidden)),            # fused Q/K/V projection
            "b_qkv": jnp.zeros((3 * hidden,), jnp.float32),
            "wo": nrm((hidden, hidden)),
            "bo": jnp.zeros((hidden,), jnp.float32),
            "ln1_g": jnp.ones((hidden,), jnp.float32),
            "ln1_b": jnp.zeros((hidden,), jnp.float32),
            "w1": nrm((hidden, intermediate)),
            "b1": jnp.zeros((intermediate,), jnp.float32),
            "w2": nrm((intermediate, hidden)),
            "b2": jnp.zeros((hidden,), jnp.float32),
            "ln2_g": jnp.ones((hidden,), jnp.float32),
            "ln2_b": jnp.zeros((hidden,), jnp.float32),
        })
    return params


# ----------------------------------------------------------------------------
# SANBertNetwork.forward  (fwd_type=0, gan=False, classification task head)
# ----------------------------------------------------------------------------
def san_bert_forward(params, input_ids, token_type_ids, attention_mask, task_id=0):
    B, S = input_ids.shape
    H = params["word_emb"].shape[1]
    nh = params["num_heads"]
    hd = H // nh

    # --- embeddings: gather is plain-JAX glue; sum in f32 (matches reference),
    #     LayerNorm in-kernel with bf16 output for the encoder stack. ---
    pos_ids = jnp.arange(S, dtype=jnp.int32)
    emb = (params["word_emb"][input_ids].astype(jnp.float32)
           + params["pos_emb"][pos_ids][None, :, :].astype(jnp.float32)
           + params["tok_emb"][token_type_ids].astype(jnp.float32))     # (B, S, H) f32
    x = layernorm(emb.reshape(B * S, H), params["emb_ln_g"], params["emb_ln_b"],
                  out_dtype=jnp.bfloat16)

    # extended attention mask: (1 - mask) * -10000, kept at (B, 1, S) and
    # broadcast inside the attention kernel (never materialized per-head).
    bias = ((1.0 - attention_mask.astype(jnp.float32)) * -10000.0)[:, None, :]

    for lyr in params["layers"]:
        # fused QKV projection: one [H, 3H] matmul (weight resident in VMEM)
        qkv = dense(x, lyr["w_qkv"], lyr["b_qkv"])

        # attention reads heads straight out of the flat (B*S, 3H) buffer and
        # writes the merged (B*S, H) context — no split/transpose/merge passes.
        ctx = attention(qkv, bias, batch=B, seq=S, num_heads=nh, head_dim=hd,
                        out_dtype=x.dtype)

        # attention output projection with fused bias + residual + LayerNorm
        x = dense(ctx, lyr["wo"], lyr["bo"], residual=x,
                  ln=(lyr["ln1_g"], lyr["ln1_b"]))

        # FFN: GELU fused into first matmul; residual + LayerNorm fused into second
        h = dense(x, lyr["w1"], lyr["b1"], act="gelu")
        x = dense(h, lyr["w2"], lyr["b2"], residual=x,
                  ln=(lyr["ln2_g"], lyr["ln2_b"]))

    sequence_output = x.reshape(B, S, H)
    cls_tok = sequence_output[:, 0, :].astype(jnp.float32)              # (B, H)

    # Pooler + task head (dropout = identity in eval) in plain JAX: (B, H) and a
    # 3-wide output are too small for a pallas_call and would hit masked stores.
    pooled = jnp.tanh(cls_tok @ params["pool_w"] + params["pool_b"])
    logits = pooled @ params["cls_w"] + params["cls_b"]
    return logits


# ----------------------------------------------------------------------------
if __name__ == "__main__":
    key = jax.random.PRNGKey(0)
    pkey, ikey = jax.random.split(key)

    B, S = 2, 8
    params = init_params(pkey, vocab=64, max_pos=16, type_vocab=2, hidden=32,
                         num_heads=4, intermediate=64, num_layers=2, n_class=3)

    input_ids = jax.random.randint(ikey, (B, S), 0, 64, dtype=jnp.int32)
    token_type_ids = jnp.zeros((B, S), dtype=jnp.int32)
    attention_mask = jnp.ones((B, S), dtype=jnp.int32).at[1, 6:].set(0)  # ragged example

    logits = san_bert_forward(params, input_ids, token_type_ids, attention_mask)
    jax.block_until_ready(logits)
    assert logits.shape == (B, 3)
    print("KERNEL_OK")
</pallas_src>

<mosaic_0001>
module attributes {stable_mosaic.version = 11 : i64} {
  func.func @_ln_kernel(%arg0: i32, %arg1: memref<16x32xf32, #tpu.memory_space<vmem>>, %arg2: memref<1x32xf32, #tpu.memory_space<vmem>>, %arg3: memref<1x32xf32, #tpu.memory_space<vmem>>, %arg4: memref<16x32xbf16, #tpu.memory_space<vmem>>) attributes {dimension_semantics = [#tpu.dimension_semantics<parallel>], iteration_bounds = array<i64: 1>, scalar_prefetch = 0 : i64, scratch_operands = 0 : i64, tpu.core_type = #tpu.core_type<tc>, window_params = [{transform_indices = @transform_0, window_bounds = array<i64: 16, 32>}, {pipeline_mode = #tpu.pipeline_mode<synchronous>, transform_indices = @transform_1, window_bounds = array<i64: 1, 32>}, {pipeline_mode = #tpu.pipeline_mode<synchronous>, transform_indices = @transform_2, window_bounds = array<i64: 1, 32>}, {transform_indices = @transform_3, window_bounds = array<i64: 16, 32>}]} {
    %c0 = arith.constant 0 : index
    %c0_0 = arith.constant 0 : index
    %0 = vector.load %arg1[%c0, %c0_0] : memref<16x32xf32, #tpu.memory_space<vmem>>, vector<16x32xf32>
    %cst = arith.constant dense<0.000000e+00> : vector<16xf32>
    %1 = vector.multi_reduction <add>, %0, %cst [1] : vector<16x32xf32> to vector<16xf32>
    %2 = vector.shape_cast %1 : vector<16xf32> to vector<16x1xf32>
    %cst_1 = arith.constant 3.200000e+01 : f32
    %3 = vector.broadcast %cst_1 : f32 to vector<16x1xf32>
    %4 = arith.divf %2, %3 : vector<16x1xf32>
    %5 = vector.broadcast %4 : vector<16x1xf32> to vector<16x32xf32>
    %6 = arith.subf %0, %5 : vector<16x32xf32>
    %7 = arith.mulf %6, %6 : vector<16x32xf32>
    %cst_2 = arith.constant dense<0.000000e+00> : vector<16xf32>
    %8 = vector.multi_reduction <add>, %7, %cst_2 [1] : vector<16x32xf32> to vector<16xf32>
    %9 = vector.shape_cast %8 : vector<16xf32> to vector<16x1xf32>
    %cst_3 = arith.constant 3.200000e+01 : f32
    %10 = vector.broadcast %cst_3 : f32 to vector<16x1xf32>
    %11 = arith.divf %9, %10 : vector<16x1xf32>
    %12 = vector.broadcast %4 : vector<16x1xf32> to vector<16x32xf32>
    %13 = arith.subf %0, %12 : vector<16x32xf32>
    %cst_4 = arith.constant 9.99999996E-13 : f32
    %14 = vector.broadcast %cst_4 : f32 to vector<16x1xf32>
    %15 = arith.addf %11, %14 : vector<16x1xf32>
    %16 = math.rsqrt %15 : vector<16x1xf32>
    %17 = vector.broadcast %16 : vector<16x1xf32> to vector<16x32xf32>
    %18 = arith.mulf %13, %17 : vector<16x32xf32>
    %c0_5 = arith.constant 0 : index
    %c0_6 = arith.constant 0 : index
    %19 = vector.load %arg2[%c0_5, %c0_6] : memref<1x32xf32, #tpu.memory_space<vmem>>, vector<1x32xf32>
    %20 = vector.broadcast %19 : vector<1x32xf32> to vector<16x32xf32>
    %21 = arith.mulf %18, %20 : vector<16x32xf32>
    %c0_7 = arith.constant 0 : index
    %c0_8 = arith.constant 0 : index
    %22 = vector.load %arg3[%c0_7, %c0_8] : memref<1x32xf32, #tpu.memory_space<vmem>>, vector<1x32xf32>
    %23 = vector.broadcast %22 : vector<1x32xf32> to vector<16x32xf32>
    %24 = arith.addf %21, %23 : vector<16x32xf32>
    %25 = arith.truncf %24 : vector<16x32xf32> to vector<16x32xbf16>
    %c0_9 = arith.constant 0 : index
    %c0_10 = arith.constant 0 : index
    %26 = vector.load %arg4[%c0_9, %c0_10] : memref<16x32xbf16, #tpu.memory_space<vmem>>, vector<16x32xbf16>
    tpu.vector_store %arg4[%c0_9, %c0_10], %25 {strides = array<i32>} : memref<16x32xbf16, #tpu.memory_space<vmem>>, vector<16x32xbf16>,
    return
  }
  func.func @transform_0(%arg0: i32) -> (i32, i32) {
    %c0_i32 = arith.constant 0 : i32
    %c0_i32_0 = arith.constant 0 : i32
    return %arg0, %c0_i32 : i32, i32
  }
  func.func @transform_1(%arg0: i32) -> (i32, i32) {
    %c0_i32 = arith.constant 0 : i32
    %c0_i32_0 = arith.constant 0 : i32
    %c0_i32_1 = arith.constant 0 : i32
    return %c0_i32, %c0_i32_0 : i32, i32
  }
  func.func @transform_2(%arg0: i32) -> (i32, i32) {
    %c0_i32 = arith.constant 0 : i32
    %c0_i32_0 = arith.constant 0 : i32
    %c0_i32_1 = arith.constant 0 : i32
    return %c0_i32, %c0_i32_0 : i32, i32
  }
  func.func @transform_3(%arg0: i32) -> (i32, i32) {
    %c0_i32 = arith.constant 0 : i32
    %c0_i32_0 = arith.constant 0 : i32
    return %arg0, %c0_i32 : i32, i32
  }
}

</mosaic_0001>

<bundles_post_ra>
// kernel: tpu_custom_call.1
= control target key start
LH: loop header
LB: loop body
LE: loop exit
PB: predicated region body
PF: predicated region fallthrough
CT: control target
= control target key end

     0   :  { %8 = vsyncpa [#allocation3], 0  ;;  %s274_s0 = inlined_call_operand.hbm [shape: f32[16,32], index: 0, kind: input, shape index: {}]   ;;  %s275_s1 = inlined_call_operand.hbm [shape: f32[1,32], index: 1, kind: input, shape index: {}]   ;;  %s276_s2 = inlined_call_operand.vmem [shape: f32[1,32], index: 2, kind: input, shape index: {}]   ;;  %s277_s3 = inlined_call_operand.hbm [shape: bf16[16,32], index: 3, kind: output, shape index: {}]  }
   0x1   :  { %9 = vsyncpa [#allocation6], 0 }
   0x2   :  { %10 = vsyncpa [#allocation4], 0  ;;  %s15_s14 = sshll.u32 %s274_s0, 4  ;;  %s230_s15 = smov [#allocation2]   ;;  %s16_s14 = int_to_ptr.hbm [resolvable:$true] %s15_s14 }
   0x3   :  { %s17_s16 = sshll.u32 %s230_s15, 4  ;;  %s29_s19 = sshll.u32 %s275_s1, 4  ;;  %s18_s16 = int_to_ptr.vmem [resolvable:$true] %s17_s16  ;;  %s30_s19 = int_to_ptr.hbm [resolvable:$true] %s29_s19 }
   0x4   :  { %s231_s20 = smov 128   ;;  %s232_s21 = smov 8  }
   0x5   :  { %23 = dma.hbm_to_vmem [thread:$0]  %s16_s14, 256, %s18_s16, [#allocation3], %s231_s20, %s231_s20, %s232_s21  }
   0x6   :  { %s233_s22 = smov [#allocation5]  }
   0x7   :  { %s31_s23 = sshll.u32 %s233_s22, 4  ;;  %s32_s23 = int_to_ptr.vmem [resolvable:$true] %s31_s23 }
   0x8   :  { %34 = dma.hbm_to_vmem [thread:$0]  %s30_s19, 16, %s32_s23, [#allocation6]  }
   0x9   :  { %224 = dma.done.wait [#allocation3], 256  }
   0xa   :  { %225 = vsyncadd [#allocation3], 4294967040 }
   0xb   :  { %226 = dma.done.wait [#allocation6], 16  }
   0xc   :  { %227 = vsyncadd [#allocation6], 4294967280  ;;  %vm47_vm0 = vcmask 261120   ;;  %v45_v0 = vld [vmem:[#allocation2] sm:$0xff]  ;;  %v46_v2 = vld [vmem:[#allocation2 + $0x8] sm:$0xff]  ;;  %v234_v4 = vmov 32.0  }
   0xd   :  { %v48_v1 = vsel %vm47_vm0, %v45_v0, 0.0  ;;  %v51_v3 = vsel %vm47_vm0, %v46_v2, 0.0  ;;  %146 = vrcp.f32 %v234_v4  ;;  %v144_v35 = vld [vmem:[#allocation5] ss:$0 sm:$0xff]  ;;  %v145_v38 = vld [vmem:[%s276_s2] ss:$0 sm:$0xff] }
   0xe   :  { %49 = vadd.xlane.f32.xlu0 %v48_v1  ;;  %vm113_vm7 = vcmask 257024   ;;  %s235_s24 = smov [#allocation7]   ;;  %s122_s2 = sshll.u32 %s277_s3, 4  ;;  %s123_s2 = int_to_ptr.hbm [resolvable:$true] %s122_s2 }
   0xf   :  { %s120_s25 = sshll.u32 %s235_s24, 4  ;;  %s236_s28 = smov 64   ;;  %s121_s25 = int_to_ptr.vmem [resolvable:$true] %s120_s25 }
  0x10   :  { %s237_s29 = smov 4  }
  0x13   :  { %v147_v5 = vpop.eup %146 }
  0x14   :  { %v55_v6 = vmul.f32 32.0, %v147_v5  ;;  %vm59_vm1 = vweird.f32 %v147_v5 }
  0x16   :  { %52 = vadd.xlane.f32.xlu0 %v51_v3  ;;  %v56_v7 = vsub.f32 1.0, %v55_v6 }
  0x18   :  { %v57_v8 = vmul.f32 %v147_v5, %v56_v7 }
  0x1a   :  { %v58_v9 = vadd.f32 %v147_v5, %v57_v8 }
  0x1c   :  { %v60_v10 = vsel %vm59_vm1, %v147_v5, %v58_v9 }
  0x81   :  { %v50_v11 = vpop.xlane.xlu0 %49 }
  0x82   :  { %v61_v12 = vmul.f32 %v60_v10, %v50_v11 }
  0x84   :  { %v63_v13 = vsub.f32 %v45_v0, %v61_v12 }
  0x86   :  { %v65_v14 = vmul.f32 %v63_v13, %v63_v13 }
  0x88   :  { %v67_v15 = vsel %vm47_vm0, %v65_v14, 0.0 }
  0x89   :  { %68 = vadd.xlane.f32.xlu1 %v67_v15  ;;  %v53_v16 = vpop.xlane.xlu0 %52 }
  0x8a   :  { %v62_v17 = vmul.f32 %v60_v10, %v53_v16 }
  0x8c   :  { %v64_v18 = vsub.f32 %v46_v2, %v62_v17 }
  0x8e   :  { %v66_v19 = vmul.f32 %v64_v18, %v64_v18 }
  0x90   :  { %v70_v20 = vsel %vm47_vm0, %v66_v19, 0.0 }
  0x91   :  { %71 = vadd.xlane.f32.xlu1 %v70_v20 }
  0xfc   :  { %v69_v21 = vpop.xlane.xlu1 %68 }
  0xfd   :  { %v73_v22 = vmul.f32 %v69_v21, %v60_v10 }
  0xff   :  { %v75_v23 = vadd.f32 1e-12, %v73_v22 }
 0x101   :  { %148 = vrsqrt.f32 %v75_v23  ;;  %vm83_vm3 = vweird.f32 %v75_v23 }
 0x104   :  { %v72_v24 = vpop.xlane.xlu1 %71 }
 0x105   :  { %v74_v25 = vmul.f32 %v72_v24, %v60_v10 }
 0x107   :  { %v149_v26 = vpop.eup %148  ;;  %v76_v27 = vadd.f32 1e-12, %v74_v25 }
 0x108   :  { %v78_v28 = vmul.f32 %v149_v26, %v75_v23  ;;  %vm84_vm2 = vweird.f32 %v149_v26 }
 0x109   :  { %150 = vrsqrt.f32 %v76_v27  ;;  %vm85_vm4 = vmor %vm83_vm3, %vm84_vm2  ;;  %vm93_vm6 = vweird.f32 %v76_v27 }
 0x10a   :  { %v79_v29 = vmul.f32 %v149_v26, %v78_v28 }
 0x10c   :  { %v80_v30 = vmul.f32 0.5, %v79_v29 }
 0x10e   :  { %v81_v31 = vsub.f32 1.5, %v80_v30 }
 0x10f   :  { %v151_v32 = vpop.eup %150 }
 0x110   :  { %v82_v33 = vmul.f32 %v149_v26, %v81_v31  ;;  %v88_v34 = vmul.f32 %v151_v32, %v76_v27  ;;  %vm94_vm5 = vweird.f32 %v151_v32 }
 0x111   :  { %vm95_vm8 = vmor %vm93_vm6, %vm94_vm5 }
 0x112   :  { %v86_v36 = vsel %vm85_vm4, %v149_v26, %v82_v33  ;;  %v89_v37 = vmul.f32 %v151_v32, %v88_v34 }
 0x113   :  { %v97_v39 = vmul.f32 %v86_v36, %v63_v13 }
 0x114   :  { %v90_v40 = vmul.f32 0.5, %v89_v37 }
 0x115   :  { %v103_v41 = vmul.f32 %v144_v35, %v97_v39 }
 0x116   :  { %v91_v42 = vsub.f32 1.5, %v90_v40 }
 0x117   :  { %v109_v43 = vadd.f32 %v145_v38, %v103_v41 }
 0x118   :  { %v92_v44 = vmul.f32 %v151_v32, %v91_v42 }
 0x119   :  { %v111_v45 = vpack.c.bf16 %v109_v43, %v109_v43 }
 0x11a   :  { %v96_v46 = vsel %vm95_vm8, %v151_v32, %v92_v44 }
 0x11b   :  { %v98_v47 = vmul.f32 %v96_v46, %v64_v18  ;;  %114 = vst.msk [vmem:[#allocation7] sm:$0xf] %vm113_vm7, %v111_v45 }
 0x11d   :  { %v104_v48 = vmul.f32 %v144_v35, %v98_v47 }
 0x11f   :  { %v110_v49 = vadd.f32 %v145_v38, %v104_v48 }
 0x121   :  { %v112_v50 = vpack.c.bf16 %v110_v49, %v110_v49 }
 0x123   :  { %115 = vst.msk [vmem:[#allocation7 + $0x4] sm:$0xf] %vm113_vm7, %v112_v50 }
 0x124   :  { %128 = dma.vmem_to_hbm [thread:$0]  %s121_s25, 128, %s123_s2, [#allocation4], %s236_s28, %s236_s28, %s237_s29  }
 0x125   :  { %228 = dma.done.wait [#allocation4], 128  }
 0x126   :  { %229 = vsyncadd [#allocation4], 4294967168 }
 0x127   :  { %133 = vsyncpa [#allocation3], 1 }
 0x128   :  { %134 = vsyncpa [#allocation6], 1 }
 0x129   :  { %135 = vsyncpa [#allocation4], 1 }

</bundles_post_ra>
